<compile_context>
chip_gen: v7x
topology: tpu7x:2x2x1
jax: 0.10.0
libtpu: 0.0.40
codegen_flags: <defaults>
</compile_context>

<pallas_src>
import math

import jax
import jax.numpy as jnp
from jax import lax
from jax.experimental import pallas as pl
from jax.experimental.pallas import tpu as pltpu


def _vmem_limit_bytes():
    """~3/4 of physical VMEM: ~96 MiB on v5e/v6e (128 MiB), ~48 MiB on v7x (64 MiB)."""
    try:
        cap = pltpu.get_tpu_info().vmem_capacity_bytes
        return int(min(max(cap * 3 // 4, 32 * 1024 * 1024), 100 * 1024 * 1024))
    except Exception:  # be conservative if the query is unavailable
        return 48 * 1024 * 1024


def _choose_tile(n, preferred, multiple):
    """Largest tile <= preferred that divides n and is a multiple of `multiple`.

    Falls back to the full dimension (always a legal block size), so blocks are
    either sublane/lane aligned or cover the whole axis — never a masked-store
    oddball like 150.
    """
    if n <= preferred:
        return n
    t = (preferred // multiple) * multiple
    while t >= multiple:
        if n % t == 0:
            return t
        t -= multiple
    return n


# --------------------------------------------------------------------------- #
# Kernels
# --------------------------------------------------------------------------- #
def _qkv_projection_kernel(x_ref, wq_ref, wk_ref, wv_ref, q_ref, k_ref, v_ref):
    # x_ref: (TM, D) bf16, w*_ref: (D, TN) bf16 -> q/k/v_ref: (TM, TN) bf16
    x = x_ref[...]
    q_ref[...] = jnp.dot(x, wq_ref[...], preferred_element_type=jnp.float32).astype(q_ref.dtype)
    k_ref[...] = jnp.dot(x, wk_ref[...], preferred_element_type=jnp.float32).astype(k_ref.dtype)
    v_ref[...] = jnp.dot(x, wv_ref[...], preferred_element_type=jnp.float32).astype(v_ref.dtype)


def _flash_attention_kernel(q_ref, k_ref, v_ref, o_ref, m_sc, l_sc, acc_sc):
    ki = pl.program_id(2)

    @pl.when(ki == 0)
    def _():
        m_sc[...] = jnp.full_like(m_sc, -jnp.inf)
        l_sc[...] = jnp.zeros_like(l_sc)
        acc_sc[...] = jnp.zeros_like(acc_sc)

    q = q_ref[0]   # (TQ, D) bf16 — already scaled by log2(e)/sqrt(D) via Wq
    k = k_ref[0]   # (TK, D) bf16
    v = v_ref[0]   # (TK, D) bf16

    # Base-2 scores: s2 = (q' @ k^T) where q' = q * log2(e)/sqrt(D) was folded
    # into Wq. Contract last dims so no k.T is materialized.
    s = lax.dot_general(
        q, k,
        dimension_numbers=(((1,), (1,)), ((), ())),
        preferred_element_type=jnp.float32,
    )                                                        # (TQ, TK) f32

    # Online softmax in base 2 (identical math to exp; all f32).
    m_prev = m_sc[...]
    m_new = jnp.maximum(m_prev, jnp.max(s, axis=-1, keepdims=True))
    alpha = jnp.exp2(m_prev - m_new)
    p = jnp.exp2(s - m_new)                                  # (TQ, TK) f32

    l_sc[...] = alpha * l_sc[...] + jnp.sum(p, axis=-1, keepdims=True)
    acc_sc[...] = alpha * acc_sc[...] + lax.dot_general(
        p.astype(v.dtype), v,                                # bf16 MXU operands
        dimension_numbers=(((1,), (0,)), ((), ())),
        preferred_element_type=jnp.float32,
    )
    m_sc[...] = m_new

    @pl.when(ki == pl.num_programs(2) - 1)
    def _():
        inv_l = pl.reciprocal(l_sc[...], approx=True)        # EUP reciprocal
        o_ref[0] = (acc_sc[...] * inv_l).astype(o_ref.dtype)


# --------------------------------------------------------------------------- #
# Wrapper
# --------------------------------------------------------------------------- #
def self_attention(x, wq, wk, wv, *, q_tile=256, kv_tile=256,
                   row_tile=512, col_tile=512):
    """x: (B, S, D) f32; wq/wk/wv: (D, D) f32 -> (B, S, D) f32."""
    B, S, D = x.shape
    rows = B * S
    vmem_limit = _vmem_limit_bytes()

    # Fold softmax scale and the exp2 base change into Wq once (tiny (D,D) op).
    scale = math.log2(math.e) / math.sqrt(D)
    x2d = x.astype(jnp.bfloat16).reshape(rows, D)
    wq_b = (wq * scale).astype(jnp.bfloat16)
    wk_b = wk.astype(jnp.bfloat16)
    wv_b = wv.astype(jnp.bfloat16)

    # ---------------- QKV projection: 3 separate lane-dense outputs ----------
    tm = _choose_tile(rows, row_tile, 16)       # bf16 sublane tile
    tn = _choose_tile(D, col_tile, 128)         # lane tile (or full D)
    # TODO(synk): for D >= ~4096 also add a K-reduction grid axis over the
    # contraction dim instead of keeping a full (tm, D) x row block resident.
    q2d, k2d, v2d = pl.pallas_call(
        _qkv_projection_kernel,
        out_shape=(
            jax.ShapeDtypeStruct((rows, D), jnp.bfloat16),
            jax.ShapeDtypeStruct((rows, D), jnp.bfloat16),
            jax.ShapeDtypeStruct((rows, D), jnp.bfloat16),
        ),
        grid_spec=pltpu.PrefetchScalarGridSpec(
            num_scalar_prefetch=0,
            # columns outer, rows inner: each weight column-slab is DMA'd from
            # HBM exactly once; x is re-streamed D/tn times (cheap vs weights).
            grid=(D // tn, rows // tm),
            in_specs=[
                pl.BlockSpec((tm, D), lambda j, i: (i, 0)),
                pl.BlockSpec((D, tn), lambda j, i: (0, j)),
                pl.BlockSpec((D, tn), lambda j, i: (0, j)),
                pl.BlockSpec((D, tn), lambda j, i: (0, j)),
            ],
            out_specs=[
                pl.BlockSpec((tm, tn), lambda j, i: (i, j)),
                pl.BlockSpec((tm, tn), lambda j, i: (i, j)),
                pl.BlockSpec((tm, tn), lambda j, i: (i, j)),
            ],
        ),
        compiler_params=pltpu.CompilerParams(
            dimension_semantics=("parallel", "parallel"),
            vmem_limit_bytes=vmem_limit,
        ),
    )(x2d, wq_b, wk_b, wv_b)

    # Pure metadata reshapes — no HBM round trip (unlike the old slab slices).
    q = q2d.reshape(B, S, D)
    k = k2d.reshape(B, S, D)
    v = v2d.reshape(B, S, D)

    # ---------------- flash-style attention over (B, q tiles, kv tiles) ------
    tq = _choose_tile(S, q_tile, 16)
    tk = _choose_tile(S, kv_tile, 16)

    # TODO(synk): if a profile shows exposed K/V DMA at small D, add
    # pipeline_mode=pl.Buffered(3) on the K/V BlockSpecs.
    return pl.pallas_call(
        _flash_attention_kernel,
        out_shape=jax.ShapeDtypeStruct((B, S, D), jnp.float32),
        grid_spec=pltpu.PrefetchScalarGridSpec(
            num_scalar_prefetch=0,
            grid=(B, S // tq, S // tk),
            in_specs=[
                pl.BlockSpec((1, tq, D), lambda b, qi, ki: (b, qi, 0)),
                pl.BlockSpec((1, tk, D), lambda b, qi, ki: (b, ki, 0)),
                pl.BlockSpec((1, tk, D), lambda b, qi, ki: (b, ki, 0)),
            ],
            out_specs=pl.BlockSpec((1, tq, D), lambda b, qi, ki: (b, qi, 0)),
            scratch_shapes=[
                pltpu.VMEM((tq, 1), jnp.float32),   # running max m
                pltpu.VMEM((tq, 1), jnp.float32),   # running denom l
                pltpu.VMEM((tq, D), jnp.float32),   # output accumulator
            ],
        ),
        compiler_params=pltpu.CompilerParams(
            dimension_semantics=("parallel", "parallel", "arbitrary"),
            vmem_limit_bytes=vmem_limit,
        ),
    )(q, k, v)


# --------------------------------------------------------------------------- #
# Reference & test
# --------------------------------------------------------------------------- #
def _reference(x, wq, wk, wv):
    """Pure f32 reference (exact module semantics)."""
    q = x @ wq
    k = x @ wk
    v = x @ wv
    scores = jnp.einsum("bsd,btd->bst", q, k) / jnp.sqrt(jnp.float32(x.shape[-1]))
    attn = jax.nn.softmax(scores, axis=-1)
    return jnp.einsum("bst,btd->bsd", attn, v)


if __name__ == "__main__":
    B, S, D = 2, 8, 32
    # TODO(synk): toy D=32 (< 128 lanes) means lane-masked partial output
    # stores; real workloads should use D (or D*heads) that is a multiple of 128.

    key = jax.random.PRNGKey(0)
    kx, kq, kk, kv = jax.random.split(key, 4)
    x = jax.random.normal(kx, (B, S, D), dtype=jnp.float32)
    wq = jax.random.normal(kq, (D, D), dtype=jnp.float32) * (1.0 / math.sqrt(D))
    wk = jax.random.normal(kk, (D, D), dtype=jnp.float32) * (1.0 / math.sqrt(D))
    wv = jax.random.normal(kv, (D, D), dtype=jnp.float32) * (1.0 / math.sqrt(D))

    out = self_attention(x, wq, wk, wv)
    out = jax.block_until_ready(out)

    ref = _reference(x, wq, wk, wv)
    assert out.shape == (B, S, D)
    # Expected error budget: bf16 MXU operands (Q/K/V/P ~ 2^-8 relative) plus
    # approx reciprocal (~2^-12) -> 1e-1 atol/rtol vs the f32 reference.
    assert jnp.allclose(out, ref, atol=1e-1, rtol=1e-1), "mismatch vs reference"

    print("KERNEL_OK")
</pallas_src>

<mosaic_0001>
module attributes {stable_mosaic.version = 11 : i64} {
  func.func @_qkv_projection_kernel(%arg0: i32, %arg1: i32, %arg2: memref<16x32xbf16, #tpu.memory_space<vmem>>, %arg3: memref<32x32xbf16, #tpu.memory_space<vmem>>, %arg4: memref<32x32xbf16, #tpu.memory_space<vmem>>, %arg5: memref<32x32xbf16, #tpu.memory_space<vmem>>, %arg6: memref<16x32xbf16, #tpu.memory_space<vmem>>, %arg7: memref<16x32xbf16, #tpu.memory_space<vmem>>, %arg8: memref<16x32xbf16, #tpu.memory_space<vmem>>) attributes {dimension_semantics = [#tpu.dimension_semantics<parallel>, #tpu.dimension_semantics<parallel>], iteration_bounds = array<i64: 1, 1>, scalar_prefetch = 0 : i64, scratch_operands = 0 : i64, tpu.core_type = #tpu.core_type<tc>, window_params = [{transform_indices = @transform_0, window_bounds = array<i64: 16, 32>}, {transform_indices = @transform_1, window_bounds = array<i64: 32, 32>}, {transform_indices = @transform_2, window_bounds = array<i64: 32, 32>}, {transform_indices = @transform_3, window_bounds = array<i64: 32, 32>}, {transform_indices = @transform_4, window_bounds = array<i64: 16, 32>}, {transform_indices = @transform_5, window_bounds = array<i64: 16, 32>}, {transform_indices = @transform_6, window_bounds = array<i64: 16, 32>}]} {
    %c0 = arith.constant 0 : index
    %c0_0 = arith.constant 0 : index
    %0 = vector.load %arg2[%c0, %c0_0] : memref<16x32xbf16, #tpu.memory_space<vmem>>, vector<16x32xbf16>
    %c0_1 = arith.constant 0 : index
    %c0_2 = arith.constant 0 : index
    %1 = vector.load %arg3[%c0_1, %c0_2] : memref<32x32xbf16, #tpu.memory_space<vmem>>, vector<32x32xbf16>
    %cst = arith.constant dense<0.000000e+00> : vector<16x32xf32>
    %2 = tpu.matmul %0, %1, %cst {dimension_numbers = #tpu.dot_dimension_numbers<[1], [0], [0], [1], [0, 0, 1, 1], [], []>} : vector<16x32xbf16>, vector<32x32xbf16>, vector<16x32xf32> -> vector<16x32xf32>
    %3 = arith.truncf %2 : vector<16x32xf32> to vector<16x32xbf16>
    %c0_3 = arith.constant 0 : index
    %c0_4 = arith.constant 0 : index
    %4 = vector.load %arg6[%c0_3, %c0_4] : memref<16x32xbf16, #tpu.memory_space<vmem>>, vector<16x32xbf16>
    tpu.vector_store %arg6[%c0_3, %c0_4], %3 {strides = array<i32>} : memref<16x32xbf16, #tpu.memory_space<vmem>>, vector<16x32xbf16>,
    %c0_5 = arith.constant 0 : index
    %c0_6 = arith.constant 0 : index
    %5 = vector.load %arg4[%c0_5, %c0_6] : memref<32x32xbf16, #tpu.memory_space<vmem>>, vector<32x32xbf16>
    %cst_7 = arith.constant dense<0.000000e+00> : vector<16x32xf32>
    %6 = tpu.matmul %0, %5, %cst_7 {dimension_numbers = #tpu.dot_dimension_numbers<[1], [0], [0], [1], [0, 0, 1, 1], [], []>} : vector<16x32xbf16>, vector<32x32xbf16>, vector<16x32xf32> -> vector<16x32xf32>
    %7 = arith.truncf %6 : vector<16x32xf32> to vector<16x32xbf16>
    %c0_8 = arith.constant 0 : index
    %c0_9 = arith.constant 0 : index
    %8 = vector.load %arg7[%c0_8, %c0_9] : memref<16x32xbf16, #tpu.memory_space<vmem>>, vector<16x32xbf16>
    tpu.vector_store %arg7[%c0_8, %c0_9], %7 {strides = array<i32>} : memref<16x32xbf16, #tpu.memory_space<vmem>>, vector<16x32xbf16>,
    %c0_10 = arith.constant 0 : index
    %c0_11 = arith.constant 0 : index
    %9 = vector.load %arg5[%c0_10, %c0_11] : memref<32x32xbf16, #tpu.memory_space<vmem>>, vector<32x32xbf16>
    %cst_12 = arith.constant dense<0.000000e+00> : vector<16x32xf32>
    %10 = tpu.matmul %0, %9, %cst_12 {dimension_numbers = #tpu.dot_dimension_numbers<[1], [0], [0], [1], [0, 0, 1, 1], [], []>} : vector<16x32xbf16>, vector<32x32xbf16>, vector<16x32xf32> -> vector<16x32xf32>
    %11 = arith.truncf %10 : vector<16x32xf32> to vector<16x32xbf16>
    %c0_13 = arith.constant 0 : index
    %c0_14 = arith.constant 0 : index
    %12 = vector.load %arg8[%c0_13, %c0_14] : memref<16x32xbf16, #tpu.memory_space<vmem>>, vector<16x32xbf16>
    tpu.vector_store %arg8[%c0_13, %c0_14], %11 {strides = array<i32>} : memref<16x32xbf16, #tpu.memory_space<vmem>>, vector<16x32xbf16>,
    return
  }
  func.func @transform_0(%arg0: i32, %arg1: i32) -> (i32, i32) {
    %c0_i32 = arith.constant 0 : i32
    %c0_i32_0 = arith.constant 0 : i32
    return %arg1, %c0_i32 : i32, i32
  }
  func.func @transform_1(%arg0: i32, %arg1: i32) -> (i32, i32) {
    %c0_i32 = arith.constant 0 : i32
    %c0_i32_0 = arith.constant 0 : i32
    return %c0_i32, %arg0 : i32, i32
  }
  func.func @transform_2(%arg0: i32, %arg1: i32) -> (i32, i32) {
    %c0_i32 = arith.constant 0 : i32
    %c0_i32_0 = arith.constant 0 : i32
    return %c0_i32, %arg0 : i32, i32
  }
  func.func @transform_3(%arg0: i32, %arg1: i32) -> (i32, i32) {
    %c0_i32 = arith.constant 0 : i32
    %c0_i32_0 = arith.constant 0 : i32
    return %c0_i32, %arg0 : i32, i32
  }
  func.func @transform_4(%arg0: i32, %arg1: i32) -> (i32, i32) {
    %c0_i32 = arith.constant 0 : i32
    return %arg1, %arg0 : i32, i32
  }
  func.func @transform_5(%arg0: i32, %arg1: i32) -> (i32, i32) {
    %c0_i32 = arith.constant 0 : i32
    return %arg1, %arg0 : i32, i32
  }
  func.func @transform_6(%arg0: i32, %arg1: i32) -> (i32, i32) {
    %c0_i32 = arith.constant 0 : i32
    return %arg1, %arg0 : i32, i32
  }
}

</mosaic_0001>

<bundles_post_ra>
// kernel: tpu_custom_call.1
= control target key start
LH: loop header
LB: loop body
LE: loop exit
PB: predicated region body
PF: predicated region fallthrough
CT: control target
= control target key end

     0   :  { %12 = vsyncpa [#allocation3], 0  ;;  %s759_s0 = inlined_call_operand.hbm [shape: bf16[16,32], index: 0, kind: input, shape index: {}]   ;;  %s760_s1 = inlined_call_operand.hbm [shape: bf16[32,32], index: 1, kind: input, shape index: {}]   ;;  %s761_s2 = inlined_call_operand.hbm [shape: bf16[32,32], index: 2, kind: input, shape index: {}]   ;;  %s762_s3 = inlined_call_operand.hbm [shape: bf16[32,32], index: 3, kind: input, shape index: {}]   ;;  %s763_s4 = inlined_call_operand.hbm [shape: bf16[16,32], index: 4, kind: output, shape index: {0}]   ;;  %s764_s5 = inlined_call_operand.hbm [shape: bf16[16,32], index: 5, kind: output, shape index: {1}]   ;;  %s765_s6 = inlined_call_operand.hbm [shape: bf16[16,32], index: 6, kind: output, shape index: {2}]  }
   0x1   :  { %13 = vsyncpa [#allocation6], 0 }
   0x2   :  { %14 = vsyncpa [#allocation9], 0 }
   0x3   :  { %15 = vsyncpa [#allocation4], 0 }
   0x4   :  { %16 = vsyncpa [#allocation12], 0  ;;  %s578_s21 = smov [#allocation5]   ;;  %s579_s23 = smov [#allocation2]  }
   0x5   :  { %s34_s22 = sshll.u32 %s578_s21, 4  ;;  %s22_s24 = sshll.u32 %s579_s23, 4  ;;  %s35_s22 = int_to_ptr.vmem [resolvable:$true] %s34_s22  ;;  %s624_s24 = int_to_ptr.vmem [resolvable:$true] %s22_s24 }
   0x6   :  { %s414_s27 = scalar_lea.hbm %s760_s1, 256 }
   0x7   :  { %p415_p0 = scmp.ne.s32.totalorder %s760_s1, %s414_s27  ;;  %p418_p1 = scmp.lt.u32.totalorder %s414_s27, %s760_s1 }
   0x9   :  { %p420_p2 = pnand %p418_p1, %p415_p0 }
   0xb   :  { %423 = shalt.err (!%p420_p2)
}
   0xc   :  { %s424_s8 = scalar_lea.vmem %s35_s22, 256  ;;  %p429_p4 = scmp.lt.s32.totalorder %s35_s22, %s35_s22 }
   0xd   :  { %p425_p3 = scmp.ne.s32.totalorder %s35_s22, %s424_s8  ;;  %p430_p5 = scmp.lt.s32.totalorder %s424_s8, %s424_s8 }
   0xf   :  { %p431_p6 = por %p430_p5, %p429_p4 }
  0x11   :  { %p432_p7 = pnand %p431_p6, %p425_p3 }
  0x13   :  { %435 = shalt.err (!%p432_p7)
}
  0x14   :  { %s580_s9 = smov 64   ;;  %s581_s10 = smov 4  }
  0x15   :  { %40 = dma.hbm_to_vmem [thread:$0]  %s760_s1, 256, %s35_s22, [#allocation6], %s580_s9, %s580_s9, %s581_s10  }
  0x16   :  { %s436_s15 = scalar_lea.hbm %s759_s0, 128 }
  0x17   :  { %p437_p8 = scmp.ne.s32.totalorder %s759_s0, %s436_s15  ;;  %p440_p9 = scmp.lt.u32.totalorder %s436_s15, %s759_s0 }
  0x19   :  { %p442_p10 = pnand %p440_p9, %p437_p8 }
  0x1b   :  { %445 = shalt.err (!%p442_p10)
}
  0x1c   :  { %s446_s20 = scalar_lea.vmem %s624_s24, 128  ;;  %p451_p12 = scmp.lt.s32.totalorder %s624_s24, %s624_s24 }
  0x1d   :  { %p447_p11 = scmp.ne.s32.totalorder %s624_s24, %s446_s20  ;;  %p452_p13 = scmp.lt.s32.totalorder %s446_s20, %s446_s20 }
  0x1f   :  { %p453_p0 = por %p452_p13, %p451_p12 }
  0x21   :  { %p454_p1 = pnand %p453_p0, %p447_p11 }
  0x23   :  { %457 = shalt.err (!%p454_p1)
}
  0x24   :  { %28 = dma.hbm_to_vmem [thread:$0]  %s759_s0, 128, %s624_s24, [#allocation3], %s580_s9, %s580_s9, %s581_s10  }
  0x25   :  { %s582_s22 = smov [#allocation7]   ;;  %s583_s25 = smov [#allocation8]  }
  0x26   :  { %s46_s23 = sshll.u32 %s582_s22, 4  ;;  %s58_s26 = sshll.u32 %s583_s25, 4  ;;  %s47_s23 = int_to_ptr.vmem [resolvable:$true] %s46_s23  ;;  %s661_s26 = int_to_ptr.vmem [resolvable:$true] %s58_s26 }
  0x27   :  { %s458_s29 = scalar_lea.hbm %s761_s2, 256 }
  0x28   :  { %p459_p2 = scmp.ne.s32.totalorder %s761_s2, %s458_s29  ;;  %p462_p3 = scmp.lt.u32.totalorder %s458_s29, %s761_s2 }
  0x2a   :  { %p464_p4 = pnand %p462_p3, %p459_p2 }
  0x2c   :  { %467 = shalt.err (!%p464_p4)
}
  0x2d   :  { %s468_s0 = scalar_lea.vmem %s47_s23, 256  ;;  %p473_p6 = scmp.lt.s32.totalorder %s47_s23, %s47_s23 }
  0x2e   :  { %p469_p5 = scmp.ne.s32.totalorder %s47_s23, %s468_s0  ;;  %p474_p7 = scmp.lt.s32.totalorder %s468_s0, %s468_s0 }
  0x30   :  { %p475_p8 = por %p474_p7, %p473_p6 }
  0x32   :  { %p476_p9 = pnand %p475_p8, %p469_p5 }
  0x34   :  { %479 = shalt.err (!%p476_p9)
}
  0x35   :  { %52 = dma.hbm_to_vmem [thread:$0]  %s761_s2, 256, %s47_s23, [#allocation6], %s580_s9, %s580_s9, %s581_s10  }
  0x36   :  { %s480_s15 = scalar_lea.hbm %s762_s3, 256 }
  0x37   :  { %p481_p10 = scmp.ne.s32.totalorder %s762_s3, %s480_s15  ;;  %p484_p11 = scmp.lt.u32.totalorder %s480_s15, %s762_s3 }
  0x39   :  { %p486_p12 = pnand %p484_p11, %p481_p10 }
  0x3b   :  { %489 = shalt.err (!%p486_p12)
}
  0x3c   :  { %s490_s20 = scalar_lea.vmem %s661_s26, 256  ;;  %p495_p0 = scmp.lt.s32.totalorder %s661_s26, %s661_s26 }
  0x3d   :  { %p491_p13 = scmp.ne.s32.totalorder %s661_s26, %s490_s20  ;;  %p496_p1 = scmp.lt.s32.totalorder %s490_s20, %s490_s20 }
  0x3f   :  { %p497_p2 = por %p496_p1, %p495_p0 }
  0x41   :  { %p498_p3 = pnand %p497_p2, %p491_p13 }
  0x43   :  { %501 = shalt.err (!%p498_p3)
}
  0x44   :  { %64 = dma.hbm_to_vmem [thread:$0]  %s762_s3, 256, %s661_s26, [#allocation9], %s580_s9, %s580_s9, %s581_s10  }
  0x45   :  { %568 = dma.done.wait [#allocation3], 128  }
  0x46   :  { %569 = vsyncadd [#allocation3], 4294967168 }
  0x47   :  { %570 = dma.done.wait [#allocation6], 512  }
  0x48   :  { %571 = vsyncadd [#allocation6], 4294966784 }
  0x49   :  { %572 = dma.done.wait [#allocation9], 256  }
  0x4a   :  { %573 = vsyncadd [#allocation9], 4294967040  ;;  %v584_v0 = vmov 0.0   ;;  %vm585_vm0 = vmmov 0   ;;  %v407_v1 = vld [vmem:[#allocation5] sm:$0xff]   ;;  %v408_v2 = vld [vmem:[#allocation5 + $0x8] sm:$0xff]  }
  0x4b   :  { %372 = vmatprep.subr.bf16.mxu0 %v584_v0  ;;  %380 = vmatprep.subr.bf16.mxu1 %v584_v0  ;;  %v409_v3 = vld [vmem:[#allocation7] sm:$0xff]   ;;  %v410_v4 = vld [vmem:[#allocation2] sm:$0xff]   ;;  %vm101_vm1 = vcmask 261120   ;;  %v411_v6 = vld [vmem:[#allocation8] sm:$0xff]   ;;  %vm154_vm2 = vcmask 257024   ;;  %s586_s3 = smov [#allocation10]  }
  0x4c   :  { %376 = vmatprep.mubr.msk.bf16.mxu0 %vm585_vm0, %v584_v0  ;;  %384 = vmatprep.mubr.msk.bf16.mxu1 %vm585_vm0, %v584_v0  ;;  %v412_v5 = vld [vmem:[#allocation7 + $0x8] sm:$0xff]   ;;  %v413_v7 = vld [vmem:[#allocation8 + $0x8] sm:$0xff]   ;;  %s296_s21 = sshll.u32 %s586_s3, 4  ;;  %s587_s22 = smov [#allocation11]   ;;  %s297_s21 = int_to_ptr.vmem [resolvable:$true] %s296_s21 }
  0x4d   :  { %373 = vmatpush3.bf16.msra.mxu0 %v407_v1  ;;  %381 = vmatpush3.bf16.msra.mxu1 %v409_v3  ;;  %s308_s23 = sshll.u32 %s587_s22, 4  ;;  %s502_s25 = scalar_lea.vmem %s297_s21, 128  ;;  %s704_s23 = int_to_ptr.vmem [resolvable:$true] %s308_s23 }
  0x4e   :  { %374 = vmatprep.subr.bf16.mxu0 %v584_v0  ;;  %382 = vmatprep.subr.bf16.mxu1 %v584_v0  ;;  %p503_p4 = scmp.ne.s32.totalorder %s297_s21, %s502_s25  ;;  %p507_p5 = scmp.lt.s32.totalorder %s297_s21, %s297_s21 }
  0x4f   :  { %p508_p6 = scmp.lt.s32.totalorder %s502_s25, %s502_s25 }
  0x51   :  { %375 = vmatpush3.bf16.msra.mxu0 %v408_v2  ;;  %383 = vmatpush3.bf16.msra.mxu1 %v412_v5  ;;  %p509_p7 = por %p508_p6, %p507_p5 }
  0x52   :  { %388 = vmatprep.subr.bf16.mxu0 %v584_v0 }
  0x53   :  { %p510_p8 = pnand %p509_p7, %p503_p4 }
  0x54   :  { %377 = vmatmul.mubr.msk.bf16.vlgmr.msra.gmra.mrb[0].mxu0 %vm101_vm1, %v410_v4  ;;  %385 = vmatmul.mubr.msk.bf16.vlgmr.msra.gmra.mrb[0].mxu1 %vm101_vm1, %v410_v4 }
  0x55   :  { %389 = vmatpush3.bf16.msra.mxu0 %v411_v6  ;;  %392 = vmatprep.mubr.msk.bf16.mxu0 %vm585_vm0, %v584_v0 }
  0x56   :  { %390 = vmatprep.subr.bf16.mxu0 %v584_v0 }
  0x59   :  { %391 = vmatpush3.bf16.msra.mxu0 %v413_v7 }
  0x5c   :  { %393 = vmatmul.mubr.msk.bf16.vlgmr.msra.gmra.mrb[4].mxu0 %vm101_vm1, %v410_v4 }
 0x127   :  { %v139_v8 = vpop.f32.mrb[0].mxu0  ;;  %v207_v12 = vpop.f32.mrb[0].mxu1 }
 0x128   :  { %v357_v9 = vpack.c.bf16 %v139_v8, %v139_v8  ;;  %v378_v10 = vpop.f32.mrb[1].mxu0  ;;  %v359_v15 = vpack.c.bf16 %v207_v12, %v207_v12  ;;  %v386_v16 = vpop.f32.mrb[1].mxu1 }
 0x129   :  { %v142_v11 = vpop.f32.mrb[2].mxu0  ;;  %v210_v17 = vpop.f32.mrb[2].mxu1 }
 0x12a   :  { %v358_v13 = vpack.c.bf16 %v142_v11, %v142_v11  ;;  %v379_v14 = vpop.f32.mrb[3].mxu0  ;;  %155 = vst.msk [vmem:[#allocation10] sm:$0xf] %vm154_vm2, %v357_v9  ;;  %v360_v18 = vpack.c.bf16 %v210_v17, %v210_v17  ;;  %v387_v19 = vpop.f32.mrb[3].mxu1  ;;  %222 = vst.msk [vmem:[#allocation11] sm:$0xf] %vm154_vm2, %v359_v15 }
 0x12c   :  { %156 = vst.msk [vmem:[#allocation10 + $0x4] sm:$0xf] %vm154_vm2, %v358_v13 }
 0x12d   :  { %513 = shalt.err (!%p510_p8)
}
 0x12e   :  { %s514_s28 = scalar_lea.hbm %s763_s4, 128 }
 0x12f   :  { %p515_p9 = scmp.ne.s32.totalorder %s763_s4, %s514_s28  ;;  %p518_p10 = scmp.lt.u32.totalorder %s514_s28, %s763_s4 }
 0x131   :  { %p520_p11 = pnand %p518_p10, %p515_p9 }
 0x133   :  { %523 = shalt.err (!%p520_p11)
}
 0x134   :  { %302 = dma.vmem_to_hbm [thread:$0]  %s297_s21, 128, %s763_s4, [#allocation4], %s580_s9, %s580_s9, %s581_s10   ;;  %223 = vst.msk [vmem:[#allocation11 + $0x4] sm:$0xf] %vm154_vm2, %v360_v18  ;;  %v274_v20 = vpop.f32.mrb[4].mxu0 }
 0x135   :  { %s588_s24 = smov [#allocation13]   ;;  %s524_s13 = scalar_lea.vmem %s704_s23, 128 }
 0x136   :  { %s320_s12 = sshll.u32 %s588_s24, 4  ;;  %p525_p12 = scmp.ne.s32.totalorder %s704_s23, %s524_s13  ;;  %s321_s12 = int_to_ptr.vmem [resolvable:$true] %s320_s12 }
 0x137   :  { %p529_p13 = scmp.lt.s32.totalorder %s704_s23, %s704_s23  ;;  %p530_p0 = scmp.lt.s32.totalorder %s524_s13, %s524_s13 }
 0x139   :  { %p531_p1 = por %p530_p0, %p529_p13 }
 0x13b   :  { %p532_p2 = pnand %p531_p1, %p525_p12 }
 0x13d   :  { %535 = shalt.err (!%p532_p2)
}
 0x13e   :  { %s536_s16 = scalar_lea.hbm %s764_s5, 128 }
 0x13f   :  { %p537_p3 = scmp.ne.s32.totalorder %s764_s5, %s536_s16  ;;  %p540_p4 = scmp.lt.u32.totalorder %s536_s16, %s764_s5 }
 0x141   :  { %p542_p5 = pnand %p540_p4, %p537_p3 }
 0x143   :  { %545 = shalt.err (!%p542_p5)
}
 0x144   :  { %314 = dma.vmem_to_hbm [thread:$0]  %s704_s23, 128, %s764_s5, [#allocation12], %s580_s9, %s580_s9, %s581_s10   ;;  %v361_v21 = vpack.c.bf16 %v274_v20, %v274_v20  ;;  %v394_v22 = vpop.f32.mrb[5].mxu0 }
 0x145   :  { %v277_v23 = vpop.f32.mrb[6].mxu0  ;;  %s546_s1 = scalar_lea.vmem %s321_s12, 128  ;;  %p551_p7 = scmp.lt.s32.totalorder %s321_s12, %s321_s12 }
 0x146   :  { %289 = vst.msk [vmem:[#allocation13] sm:$0xf] %vm154_vm2, %v361_v21  ;;  %v362_v24 = vpack.c.bf16 %v277_v23, %v277_v23  ;;  %v395_v25 = vpop.f32.mrb[7].mxu0  ;;  %p547_p6 = scmp.ne.s32.totalorder %s321_s12, %s546_s1  ;;  %p552_p8 = scmp.lt.s32.totalorder %s546_s1, %s546_s1 }
 0x148   :  { %290 = vst.msk [vmem:[#allocation13 + $0x4] sm:$0xf] %vm154_vm2, %v362_v24  ;;  %p553_p9 = por %p552_p8, %p551_p7 }
 0x14a   :  { %p554_p10 = pnand %p553_p9, %p547_p6 }
 0x14c   :  { %557 = shalt.err (!%p554_p10)
}
 0x14d   :  { %s558_s5 = scalar_lea.hbm %s765_s6, 128 }
 0x14e   :  { %p559_p11 = scmp.ne.s32.totalorder %s765_s6, %s558_s5  ;;  %p562_p12 = scmp.lt.u32.totalorder %s558_s5, %s765_s6 }
 0x150   :  { %p564_p13 = pnand %p562_p12, %p559_p11 }
 0x152   :  { %567 = shalt.err (!%p564_p13)
}
 0x153   :  { %326 = dma.vmem_to_hbm [thread:$0]  %s321_s12, 128, %s765_s6, [#allocation12], %s580_s9, %s580_s9, %s581_s10  }
 0x154   :  { %574 = dma.done.wait [#allocation4], 128  }
 0x155   :  { %575 = vsyncadd [#allocation4], 4294967168 }
 0x156   :  { %576 = dma.done.wait [#allocation12], 256  }
 0x157   :  { %577 = vsyncadd [#allocation12], 4294967040 }
 0x158   :  { %336 = vsyncpa [#allocation3], 1 }
 0x159   :  { %337 = vsyncpa [#allocation6], 1 }
 0x15a   :  { %338 = vsyncpa [#allocation9], 1 }
 0x15b   :  { %339 = vsyncpa [#allocation4], 1 }
 0x15c   :  { %340 = vsyncpa [#allocation12], 1 }

</bundles_post_ra>
